<compile_context>
chip_gen: v5e
topology: v5e:2x2
jax: 0.10.0
libtpu: 0.0.40
codegen_flags: <defaults>
</compile_context>

<pallas_src>
import jax
import jax.numpy as jnp
from jax.experimental import pallas as pl
from jax.experimental.pallas import tpu as pltpu

LANE = 128            # lane width
SUB = 8               # f32 sublanes per vreg
TILE_BYTES = 4 << 20  # target bytes per streamed input tile (dtype-agnostic)
NCORES = 2            # leading "parallel" axis; splits across TCs on v7x/megacore
EPS = 1e-8            # torch cosine_similarity eps


def _make_kernel(block_r, steps_per_core, needs_mask):
    dense = (block_r % SUB == 0)

    def fold(x):
        if dense:
            # vreg-dense partial sums: fold block rows onto an (8, 128)
            # accumulator with pure VPU adds; XLU work deferred to wrapper.
            return jnp.sum(x.reshape(block_r // SUB, SUB, LANE), axis=0)
        # ragged (tiny) block: single (1, 128) partial row.
        return jnp.sum(x, axis=0, keepdims=True)

    def kernel(nrows_ref, a_ref, b_ref, part_ref):
        c = pl.program_id(0)            # core slice
        s = pl.program_id(1)            # step within the core slice
        k = c * steps_per_core + s      # unclamped global block index

        @pl.when(s == 0)
        def _init():
            part_ref[...] = jnp.zeros_like(part_ref)

        # Upcast on-chip (VPU); inputs stream in native dtype.
        a = a_ref[...].astype(jnp.float32)
        b = b_ref[...].astype(jnp.float32)

        def accumulate(av, bv):
            part_ref[0, 0] += fold(av * bv)   # sum a*b
            part_ref[0, 1] += fold(av * av)   # sum a*a
            part_ref[0, 2] += fold(bv * bv)   # sum b*b

        if needs_mask:
            rows_valid = nrows_ref[0]
            is_tail = (k + 1) * block_r > rows_valid

            # Hot path: full in-range block, no mask work.
            @pl.when(jnp.logical_not(is_tail))
            def _hot():
                accumulate(a, b)

            # Tail / fully-OOB padding block: mask rows past the row count.
            @pl.when(is_tail)
            def _tail():
                row_ids = k * block_r + jax.lax.broadcasted_iota(
                    jnp.int32, (block_r, 1), 0)
                keep = row_ids < rows_valid            # (block_r, 1) -> lanes
                accumulate(jnp.where(keep, a, 0.0), jnp.where(keep, b, 0.0))
        else:
            accumulate(a, b)

    return kernel


def contrastive_loss(output1, output2, target, margin=0.5, block_rows=None):
    a = jnp.ravel(output1)
    b = jnp.ravel(output2)
    assert a.shape == b.shape
    n = a.shape[0]
    itemsize = jnp.dtype(a.dtype).itemsize

    # Lane-dense (rows, 128) slab; only a ragged remainder forces a small pad.
    rem = n % LANE
    if rem:
        a = jnp.pad(a, (0, LANE - rem))
        b = jnp.pad(b, (0, LANE - rem))
    rows = a.shape[0] // LANE
    a2 = a.reshape(rows, LANE)
    b2 = b.reshape(rows, LANE)

    # Block rows: byte-scaled (constant tile bytes across dtypes), rounded to
    # the packed sublane multiple (8 f32, 16 bf16, 32 int8).
    packing = max(1, 4 // itemsize)
    sub_mult = SUB * packing
    if block_rows is None:
        block_rows = max(sub_mult, TILE_BYTES // (LANE * itemsize))
    if rows <= block_rows:
        block_r = rows                                   # single full-extent block
    else:
        block_r = max(sub_mult, (block_rows // sub_mult) * sub_mult)

    total_steps = pl.cdiv(rows, block_r)
    steps_per_core = pl.cdiv(total_steps, NCORES)
    # Mask needed if the last real block is partial OR the core split adds
    # fully-out-of-range padding steps.
    needs_mask = (NCORES * steps_per_core * block_r) != rows
    last_block = total_steps - 1
    acc_rows = SUB if (block_r % SUB == 0) else 1

    def stream_map(c, s):
        # Clamp so padding steps never DMA out of bounds; their rows are
        # masked off in-kernel via the *unclamped* global row index.
        return (jnp.minimum(c * steps_per_core + s, last_block), 0)

    nrows = jnp.array([rows], jnp.int32)

    # 2 inputs x 2 pipeline buffers of the tile, plus headroom.  Explicit so
    # the 4 MiB tile also fits v5e's 16 MiB default scoped-VMEM limit.
    vmem_limit = max(int(4 * block_r * LANE * itemsize + (6 << 20)), 16 << 20)
    cost = pl.CostEstimate(flops=6 * n, transcendentals=0,
                           bytes_accessed=2 * n * itemsize)

    partials = pl.pallas_call(
        _make_kernel(block_r, steps_per_core, needs_mask),
        out_shape=jax.ShapeDtypeStruct((NCORES, 3, acc_rows, LANE), jnp.float32),
        grid_spec=pltpu.PrefetchScalarGridSpec(
            num_scalar_prefetch=0,
            grid=(NCORES, steps_per_core),
            in_specs=[
                pl.BlockSpec(memory_space=pltpu.SMEM),          # rows (int32)
                pl.BlockSpec((block_r, LANE), stream_map),      # output1 slab
                pl.BlockSpec((block_r, LANE), stream_map),      # output2 slab
            ],
            out_specs=pl.BlockSpec((1, 3, acc_rows, LANE),
                                   lambda c, s: (c, 0, 0, 0)),  # per-core partials
        ),
        compiler_params=pltpu.CompilerParams(
            dimension_semantics=("parallel", "arbitrary"),
            vmem_limit_bytes=vmem_limit),
        cost_estimate=cost,
    )(nrows, a2, b2)

    # Tiny cross-core / cross-lane epilogue (a handful of scalar XLA ops).
    sums = jnp.sum(partials, axis=(0, 2, 3))       # (3,): dot, ||a||^2, ||b||^2
    dot, sq_a, sq_b = sums[0], sums[1], sums[2]
    # torch.cosine_similarity clamps EACH norm at eps separately.
    na = jnp.maximum(jnp.sqrt(sq_a), EPS)
    nb = jnp.maximum(jnp.sqrt(sq_b), EPS)
    dist = dot / (na * nb)
    t = jnp.asarray(target, jnp.float32)
    hinge = jnp.maximum(jnp.float32(margin) - dist, 0.0)
    return jnp.mean((1.0 - t) * dist * dist + t * hinge * hinge)


def _reference(output1, output2, target, margin=0.5):
    a = jnp.asarray(output1, jnp.float32).reshape(1, -1)
    b = jnp.asarray(output2, jnp.float32).reshape(1, -1)
    dot = jnp.sum(a * b, axis=1)
    na = jnp.maximum(jnp.linalg.norm(a, axis=1), EPS)
    nb = jnp.maximum(jnp.linalg.norm(b, axis=1), EPS)
    dist = dot / (na * nb)
    t = jnp.asarray(target, jnp.float32)
    return jnp.mean((1.0 - t) * dist ** 2 +
                    t * jnp.clip(margin - dist, 0.0, None) ** 2)


if __name__ == "__main__":
    key = jax.random.PRNGKey(0)
    k1, k2, k3, k4 = jax.random.split(key, 4)

    # Case 1: small, lane-aligned (N=256 -> rows=2), single-element target.
    o1 = jax.random.normal(k1, (8, 32), dtype=jnp.float32)
    o2 = jax.random.normal(k2, (8, 32), dtype=jnp.float32)
    t1 = jnp.array([1.0], dtype=jnp.float32)
    out1 = jax.block_until_ready(contrastive_loss(o1, o2, t1))
    ref1 = _reference(o1, o2, t1)
    assert jnp.allclose(out1, ref1, atol=1e-5, rtol=1e-5), (out1, ref1)

    # Case 2: multi-block grid split across both "cores" with tail masking
    # (rows=20, block=8 -> grid (2, 2), one partial tail + one fully-masked
    # padding step) and a multi-element target.
    o3 = jax.random.normal(k3, (40, 64), dtype=jnp.float32)
    o4 = jax.random.normal(k4, (40, 64), dtype=jnp.float32)
    t2 = jnp.array([1.0, 0.0, 0.5], dtype=jnp.float32)
    out2 = jax.block_until_ready(contrastive_loss(o3, o4, t2, block_rows=8))
    ref2 = _reference(o3, o4, t2)
    assert jnp.allclose(out2, ref2, atol=1e-5, rtol=1e-5), (out2, ref2)

    # Case 3: ragged N (150, not a multiple of 128) -> minimal-pad path.
    o5 = jax.random.normal(k1, (3, 50), dtype=jnp.float32)
    o6 = jax.random.normal(k2, (3, 50), dtype=jnp.float32)
    t3 = jnp.array([0.0], dtype=jnp.float32)
    out3 = jax.block_until_ready(contrastive_loss(o5, o6, t3))
    ref3 = _reference(o5, o6, t3)
    assert jnp.allclose(out3, ref3, atol=1e-5, rtol=1e-5), (out3, ref3)

    # Case 4: bf16 inputs (native-dtype DMA, on-chip f32 upcast, packed tiling).
    o7 = jax.random.normal(k3, (32, 64), dtype=jnp.bfloat16)
    o8 = jax.random.normal(k4, (32, 64), dtype=jnp.bfloat16)
    t4 = jnp.array([0.25], dtype=jnp.float32)
    out4 = jax.block_until_ready(contrastive_loss(o7, o8, t4))
    ref4 = _reference(o7, o8, t4)
    assert jnp.allclose(out4, ref4, atol=1e-4, rtol=1e-4), (out4, ref4)

    print("KERNEL_OK")
</pallas_src>

<mosaic_0001>
module attributes {stable_mosaic.version = 11 : i64} {
  func.func @kernel(%arg0: i32, %arg1: i32, %arg2: memref<1xi32, #tpu.memory_space<smem>>, %arg3: memref<2x128xf32, #tpu.memory_space<vmem>>, %arg4: memref<2x128xf32, #tpu.memory_space<vmem>>, %arg5: memref<1x3x1x128xf32, #tpu.memory_space<vmem>>) attributes {dimension_semantics = [#tpu.dimension_semantics<parallel>, #tpu.dimension_semantics<arbitrary>], iteration_bounds = array<i64: 2, 1>, scalar_prefetch = 0 : i64, scratch_operands = 0 : i64, tpu.core_type = #tpu.core_type<tc>, window_params = [{transform_indices = @transform_0, window_bounds = array<i64: 1>}, {transform_indices = @transform_1, window_bounds = array<i64: 2, 128>}, {transform_indices = @transform_2, window_bounds = array<i64: 2, 128>}, {transform_indices = @transform_3, window_bounds = array<i64: 1, 3, 1, 128>}]} {
    %c1_i32 = arith.constant 1 : i32
    %0 = arith.muli %arg0, %c1_i32 : i32
    %1 = arith.addi %0, %arg1 : i32
    %c0_i32 = arith.constant 0 : i32
    %2 = arith.cmpi eq, %arg1, %c0_i32 : i32
    %3 = arith.extui %2 : i1 to i32
    %c0_i32_0 = arith.constant 0 : i32
    %4 = arith.cmpi ne, %3, %c0_i32_0 : i32
    scf.if %4 {
      %cst = arith.constant 0.000000e+00 : f32
      %16 = vector.broadcast %cst : f32 to vector<1x3x1x128xf32>
      %c0_8 = arith.constant 0 : index
      %c0_9 = arith.constant 0 : index
      %c0_10 = arith.constant 0 : index
      %c0_11 = arith.constant 0 : index
      %17 = vector.load %arg5[%c0_8, %c0_9, %c0_10, %c0_11] : memref<1x3x1x128xf32, #tpu.memory_space<vmem>>, vector<1x3x1x128xf32>
      tpu.vector_store %arg5[%c0_8, %c0_9, %c0_10, %c0_11], %16 {strides = array<i32>} : memref<1x3x1x128xf32, #tpu.memory_space<vmem>>, vector<1x3x1x128xf32>,
    } else {
    }
    %c0 = arith.constant 0 : index
    %c0_1 = arith.constant 0 : index
    %5 = vector.load %arg3[%c0, %c0_1] : memref<2x128xf32, #tpu.memory_space<vmem>>, vector<2x128xf32>
    %c0_2 = arith.constant 0 : index
    %c0_3 = arith.constant 0 : index
    %6 = vector.load %arg4[%c0_2, %c0_3] : memref<2x128xf32, #tpu.memory_space<vmem>>, vector<2x128xf32>
    %c0_4 = arith.constant 0 : index
    %7 = memref.load %arg2[%c0_4] : memref<1xi32, #tpu.memory_space<smem>>
    %c1_i32_5 = arith.constant 1 : i32
    %8 = arith.addi %1, %c1_i32_5 : i32
    %c2_i32 = arith.constant 2 : i32
    %9 = arith.muli %8, %c2_i32 : i32
    %10 = arith.cmpi sgt, %9, %7 : i32
    %true = arith.constant true
    %11 = arith.xori %10, %true : i1
    %12 = arith.extui %11 : i1 to i32
    %c0_i32_6 = arith.constant 0 : i32
    %13 = arith.cmpi ne, %12, %c0_i32_6 : i32
    scf.if %13 {
      %c0_8 = arith.constant 0 : index
      %c0_9 = arith.constant 0 : index
      %c0_10 = arith.constant 0 : index
      %c0_11 = arith.constant 0 : index
      %16 = vector.load %arg5[%c0_8, %c0_9, %c0_10, %c0_11] : memref<1x3x1x128xf32, #tpu.memory_space<vmem>>, vector<1x1x1x128xf32>
      %17 = vector.shape_cast %16 : vector<1x1x1x128xf32> to vector<1x128xf32>
      %18 = arith.mulf %5, %6 : vector<2x128xf32>
      %cst = arith.constant dense<0.000000e+00> : vector<128xf32>
      %19 = vector.multi_reduction <add>, %18, %cst [0] : vector<2x128xf32> to vector<128xf32>
      %20 = vector.shape_cast %19 : vector<128xf32> to vector<1x128xf32>
      %21 = arith.addf %17, %20 : vector<1x128xf32>
      %c0_12 = arith.constant 0 : index
      %c0_13 = arith.constant 0 : index
      %c0_14 = arith.constant 0 : index
      %c0_15 = arith.constant 0 : index
      %22 = vector.load %arg5[%c0_12, %c0_13, %c0_14, %c0_15] : memref<1x3x1x128xf32, #tpu.memory_space<vmem>>, vector<1x1x1x128xf32>
      %23 = vector.shape_cast %22 : vector<1x1x1x128xf32> to vector<1x128xf32>
      %24 = vector.shape_cast %21 : vector<1x128xf32> to vector<1x1x1x128xf32>
      tpu.vector_store %arg5[%c0_12, %c0_13, %c0_14, %c0_15], %24 {strides = array<i32>} : memref<1x3x1x128xf32, #tpu.memory_space<vmem>>, vector<1x1x1x128xf32>,
      %c0_16 = arith.constant 0 : index
      %c1 = arith.constant 1 : index
      %c0_17 = arith.constant 0 : index
      %c0_18 = arith.constant 0 : index
      %25 = vector.load %arg5[%c0_16, %c1, %c0_17, %c0_18] : memref<1x3x1x128xf32, #tpu.memory_space<vmem>>, vector<1x1x1x128xf32>
      %26 = vector.shape_cast %25 : vector<1x1x1x128xf32> to vector<1x128xf32>
      %27 = arith.mulf %5, %5 : vector<2x128xf32>
      %cst_19 = arith.constant dense<0.000000e+00> : vector<128xf32>
      %28 = vector.multi_reduction <add>, %27, %cst_19 [0] : vector<2x128xf32> to vector<128xf32>
      %29 = vector.shape_cast %28 : vector<128xf32> to vector<1x128xf32>
      %30 = arith.addf %26, %29 : vector<1x128xf32>
      %c0_20 = arith.constant 0 : index
      %c1_21 = arith.constant 1 : index
      %c0_22 = arith.constant 0 : index
      %c0_23 = arith.constant 0 : index
      %31 = vector.load %arg5[%c0_20, %c1_21, %c0_22, %c0_23] : memref<1x3x1x128xf32, #tpu.memory_space<vmem>>, vector<1x1x1x128xf32>
      %32 = vector.shape_cast %31 : vector<1x1x1x128xf32> to vector<1x128xf32>
      %33 = vector.shape_cast %30 : vector<1x128xf32> to vector<1x1x1x128xf32>
      tpu.vector_store %arg5[%c0_20, %c1_21, %c0_22, %c0_23], %33 {strides = array<i32>} : memref<1x3x1x128xf32, #tpu.memory_space<vmem>>, vector<1x1x1x128xf32>,
      %c0_24 = arith.constant 0 : index
      %c2 = arith.constant 2 : index
      %c0_25 = arith.constant 0 : index
      %c0_26 = arith.constant 0 : index
      %34 = vector.load %arg5[%c0_24, %c2, %c0_25, %c0_26] : memref<1x3x1x128xf32, #tpu.memory_space<vmem>>, vector<1x1x1x128xf32>
      %35 = vector.shape_cast %34 : vector<1x1x1x128xf32> to vector<1x128xf32>
      %36 = arith.mulf %6, %6 : vector<2x128xf32>
      %cst_27 = arith.constant dense<0.000000e+00> : vector<128xf32>
      %37 = vector.multi_reduction <add>, %36, %cst_27 [0] : vector<2x128xf32> to vector<128xf32>
      %38 = vector.shape_cast %37 : vector<128xf32> to vector<1x128xf32>
      %39 = arith.addf %35, %38 : vector<1x128xf32>
      %c0_28 = arith.constant 0 : index
      %c2_29 = arith.constant 2 : index
      %c0_30 = arith.constant 0 : index
      %c0_31 = arith.constant 0 : index
      %40 = vector.load %arg5[%c0_28, %c2_29, %c0_30, %c0_31] : memref<1x3x1x128xf32, #tpu.memory_space<vmem>>, vector<1x1x1x128xf32>
      %41 = vector.shape_cast %40 : vector<1x1x1x128xf32> to vector<1x128xf32>
      %42 = vector.shape_cast %39 : vector<1x128xf32> to vector<1x1x1x128xf32>
      tpu.vector_store %arg5[%c0_28, %c2_29, %c0_30, %c0_31], %42 {strides = array<i32>} : memref<1x3x1x128xf32, #tpu.memory_space<vmem>>, vector<1x1x1x128xf32>,
    } else {
    }
    %14 = arith.extui %10 : i1 to i32
    %c0_i32_7 = arith.constant 0 : i32
    %15 = arith.cmpi ne, %14, %c0_i32_7 : i32
    scf.if %15 {
      %c2_i32_8 = arith.constant 2 : i32
      %16 = arith.muli %1, %c2_i32_8 : i32
      %17 = tpu.iota {dimensions = array<i32: 0>} : vector<2x1xi32>
      %18 = vector.broadcast %16 : i32 to vector<2x1xi32>
      %19 = arith.addi %18, %17 : vector<2x1xi32>
      %20 = vector.broadcast %7 : i32 to vector<2x1xi32>
      %21 = arith.cmpi slt, %19, %20 : vector<2x1xi32>
      %cst = arith.constant 0.000000e+00 : f32
      %22 = vector.shape_cast %21 : vector<2x1xi1> to vector<2x1xi1>
      %23 = vector.broadcast %22 : vector<2x1xi1> to vector<2x128xi1>
      %24 = vector.broadcast %cst : f32 to vector<2x128xf32>
      %25 = arith.select %23, %5, %24 : vector<2x128xi1>, vector<2x128xf32>
      %cst_9 = arith.constant 0.000000e+00 : f32
      %26 = vector.shape_cast %21 : vector<2x1xi1> to vector<2x1xi1>
      %27 = vector.broadcast %26 : vector<2x1xi1> to vector<2x128xi1>
      %28 = vector.broadcast %cst_9 : f32 to vector<2x128xf32>
      %29 = arith.select %27, %6, %28 : vector<2x128xi1>, vector<2x128xf32>
      %c0_10 = arith.constant 0 : index
      %c0_11 = arith.constant 0 : index
      %c0_12 = arith.constant 0 : index
      %c0_13 = arith.constant 0 : index
      %30 = vector.load %arg5[%c0_10, %c0_11, %c0_12, %c0_13] : memref<1x3x1x128xf32, #tpu.memory_space<vmem>>, vector<1x1x1x128xf32>
      %31 = vector.shape_cast %30 : vector<1x1x1x128xf32> to vector<1x128xf32>
      %32 = arith.mulf %25, %29 : vector<2x128xf32>
      %cst_14 = arith.constant dense<0.000000e+00> : vector<128xf32>
      %33 = vector.multi_reduction <add>, %32, %cst_14 [0] : vector<2x128xf32> to vector<128xf32>
      %34 = vector.shape_cast %33 : vector<128xf32> to vector<1x128xf32>
      %35 = arith.addf %31, %34 : vector<1x128xf32>
      %c0_15 = arith.constant 0 : index
      %c0_16 = arith.constant 0 : index
      %c0_17 = arith.constant 0 : index
      %c0_18 = arith.constant 0 : index
      %36 = vector.load %arg5[%c0_15, %c0_16, %c0_17, %c0_18] : memref<1x3x1x128xf32, #tpu.memory_space<vmem>>, vector<1x1x1x128xf32>
      %37 = vector.shape_cast %36 : vector<1x1x1x128xf32> to vector<1x128xf32>
      %38 = vector.shape_cast %35 : vector<1x128xf32> to vector<1x1x1x128xf32>
      tpu.vector_store %arg5[%c0_15, %c0_16, %c0_17, %c0_18], %38 {strides = array<i32>} : memref<1x3x1x128xf32, #tpu.memory_space<vmem>>, vector<1x1x1x128xf32>,
      %c0_19 = arith.constant 0 : index
      %c1 = arith.constant 1 : index
      %c0_20 = arith.constant 0 : index
      %c0_21 = arith.constant 0 : index
      %39 = vector.load %arg5[%c0_19, %c1, %c0_20, %c0_21] : memref<1x3x1x128xf32, #tpu.memory_space<vmem>>, vector<1x1x1x128xf32>
      %40 = vector.shape_cast %39 : vector<1x1x1x128xf32> to vector<1x128xf32>
      %41 = arith.mulf %25, %25 : vector<2x128xf32>
      %cst_22 = arith.constant dense<0.000000e+00> : vector<128xf32>
      %42 = vector.multi_reduction <add>, %41, %cst_22 [0] : vector<2x128xf32> to vector<128xf32>
      %43 = vector.shape_cast %42 : vector<128xf32> to vector<1x128xf32>
      %44 = arith.addf %40, %43 : vector<1x128xf32>
      %c0_23 = arith.constant 0 : index
      %c1_24 = arith.constant 1 : index
      %c0_25 = arith.constant 0 : index
      %c0_26 = arith.constant 0 : index
      %45 = vector.load %arg5[%c0_23, %c1_24, %c0_25, %c0_26] : memref<1x3x1x128xf32, #tpu.memory_space<vmem>>, vector<1x1x1x128xf32>
      %46 = vector.shape_cast %45 : vector<1x1x1x128xf32> to vector<1x128xf32>
      %47 = vector.shape_cast %44 : vector<1x128xf32> to vector<1x1x1x128xf32>
      tpu.vector_store %arg5[%c0_23, %c1_24, %c0_25, %c0_26], %47 {strides = array<i32>} : memref<1x3x1x128xf32, #tpu.memory_space<vmem>>, vector<1x1x1x128xf32>,
      %c0_27 = arith.constant 0 : index
      %c2 = arith.constant 2 : index
      %c0_28 = arith.constant 0 : index
      %c0_29 = arith.constant 0 : index
      %48 = vector.load %arg5[%c0_27, %c2, %c0_28, %c0_29] : memref<1x3x1x128xf32, #tpu.memory_space<vmem>>, vector<1x1x1x128xf32>
      %49 = vector.shape_cast %48 : vector<1x1x1x128xf32> to vector<1x128xf32>
      %50 = arith.mulf %29, %29 : vector<2x128xf32>
      %cst_30 = arith.constant dense<0.000000e+00> : vector<128xf32>
      %51 = vector.multi_reduction <add>, %50, %cst_30 [0] : vector<2x128xf32> to vector<128xf32>
      %52 = vector.shape_cast %51 : vector<128xf32> to vector<1x128xf32>
      %53 = arith.addf %49, %52 : vector<1x128xf32>
      %c0_31 = arith.constant 0 : index
      %c2_32 = arith.constant 2 : index
      %c0_33 = arith.constant 0 : index
      %c0_34 = arith.constant 0 : index
      %54 = vector.load %arg5[%c0_31, %c2_32, %c0_33, %c0_34] : memref<1x3x1x128xf32, #tpu.memory_space<vmem>>, vector<1x1x1x128xf32>
      %55 = vector.shape_cast %54 : vector<1x1x1x128xf32> to vector<1x128xf32>
      %56 = vector.shape_cast %53 : vector<1x128xf32> to vector<1x1x1x128xf32>
      tpu.vector_store %arg5[%c0_31, %c2_32, %c0_33, %c0_34], %56 {strides = array<i32>} : memref<1x3x1x128xf32, #tpu.memory_space<vmem>>, vector<1x1x1x128xf32>,
    } else {
    }
    return
  }
  func.func @transform_0(%arg0: i32, %arg1: i32) -> i32 {
    %c0_i32 = arith.constant 0 : i32
    %c0_i32_0 = arith.constant 0 : i32
    return %c0_i32 : i32
  }
  func.func @transform_1(%arg0: i32, %arg1: i32) -> (i32, i32) {
    %c1_i32 = arith.constant 1 : i32
    %0 = arith.muli %arg0, %c1_i32 : i32
    %1 = arith.addi %0, %arg1 : i32
    %c0_i32 = arith.constant 0 : i32
    %2 = arith.minsi %1, %c0_i32 : i32
    %c0_i32_0 = arith.constant 0 : i32
    %c0_i32_1 = arith.constant 0 : i32
    return %2, %c0_i32_0 : i32, i32
  }
  func.func @transform_2(%arg0: i32, %arg1: i32) -> (i32, i32) {
    %c1_i32 = arith.constant 1 : i32
    %0 = arith.muli %arg0, %c1_i32 : i32
    %1 = arith.addi %0, %arg1 : i32
    %c0_i32 = arith.constant 0 : i32
    %2 = arith.minsi %1, %c0_i32 : i32
    %c0_i32_0 = arith.constant 0 : i32
    %c0_i32_1 = arith.constant 0 : i32
    return %2, %c0_i32_0 : i32, i32
  }
  func.func @transform_3(%arg0: i32, %arg1: i32) -> (i32, i32, i32, i32) {
    %c0_i32 = arith.constant 0 : i32
    %c0_i32_0 = arith.constant 0 : i32
    %c0_i32_1 = arith.constant 0 : i32
    %c0_i32_2 = arith.constant 0 : i32
    return %arg0, %c0_i32, %c0_i32_0, %c0_i32_1 : i32, i32, i32, i32
  }
}

</mosaic_0001>

<bundles_post_ra>
// kernel: tpu_custom_call.1
= control target key start
LH: loop header
LB: loop body
LE: loop exit
PB: predicated region body
PF: predicated region fallthrough
CT: control target
= control target key end

     0   :  { %s929_s0 = inlined_call_operand.<no memory space> [shape: s32[1], index: 0, kind: input, shape index: {}]   ;;  %s930_s1 = inlined_call_operand.vmem [shape: f32[2,128], index: 1, kind: input, shape index: {}]   ;;  %s931_s2 = inlined_call_operand.hbm [shape: f32[2,128], index: 2, kind: input, shape index: {}]   ;;  %s932_s3 = inlined_call_operand.hbm [shape: f32[2,3,1,128], index: 3, kind: output, shape index: {}]  }
   0x1   :  { %8 = sst [smem:[#allocation2]] %s929_s0 }
   0x2   :  { %9 = vsyncpa [#allocation4], 0 }
   0x3   :  { %11 = vsyncpa [#allocation4 + $0x1], 0 }
   0x4   :  { %12 = vsyncpa [#allocation5], 0 }
   0x5   :  { %14 = vsyncpa [#allocation5 + $0x1], 0  ;;  %s744_s14 = smov 0   ;;  %s746_s15 = smov 0  }
   0x6   :  { %s748_s16 = smov 0   ;;  %s750_s17 = smov 0  }
   0x7   :  { %s752_s18 = smov 0   ;;  %s754_s19 = smov 0  }
   0x8   :  { %s756_s20 = smov 0   ;;  %s758_s21 = smov 0  }
   0x9 LB: > { %s463_s0 = sadd.s32 4294967295, %s715_s21   ;;  %s464_s22 = sadd.s32 4294967294, %s715_s21   ;;  %s715_s21 = sphi %s758_s21, %s20_s21   ;;  %s711_s20 = sphi %s756_s20, %s943_s20   ;;  %s707_s19 = sphi %s754_s19, %s942_s19   ;;  %s703_s18 = sphi %s752_s18, %s919_s18   ;;  %s699_s17 = sphi %s750_s17, %s941_s17   ;;  %s695_s16 = sphi %s748_s16, %s940_s16   ;;  %s691_s15 = sphi %s746_s15, %s939_s15   ;;  %s687_s14 = sphi %s744_s14, %s938_s14  }
   0xa   : > { %s32_s23 = sadd.s32 1, %s711_s20  ;;  %p684_p1 = scmp.ne.s32.totalorder %s703_s18, 0 }
   0xb   : > { %p34_p0 = scmp.ge.s32.totalorder %s32_s23, 2  ;;  %p106_p2 = scmp.eq.s32.totalorder %s715_s21, 0 }
   0xc   : > { %p111_p3 = scmp.ne.s32.totalorder %s703_s18, %s699_s17  ;;  %p112_p5 = scmp.eq.s32.totalorder %s463_s0, 0 }
   0xd   : > { %s945_s23 = smov (%p34_p0, %s32_s23), 0  ;;  %p790_p4 = por %p684_p1, %p106_p2 }
   0xe   : > { %p794_p6 = por %p112_p5, %p111_p3  ;;  %s121_s26 = ssub.s32 %s711_s20, %s945_s23 }
   0xf   : > { %p122_p7 = scmp.eq.s32.totalorder %s121_s26, 0  ;;  %s124_s27 = sadd.s32 1, %s695_s16 }
  0x10   : > { %p134_p8 = scmp.ne.s32.totalorder %s695_s16, %s691_s15  ;;  %p135_p9 = scmp.eq.s32.totalorder %s463_s0, 1 }
  0x11   : > { %s802_s28 = scalar_select %p122_p7, %s695_s16, %s124_s27  }
  0x12   : > { %p140_p10 = scmp.ne.s32.totalorder %s691_s15, %s687_s14  ;;  %p141_p11 = scmp.eq.s32.totalorder %s464_s22, 1 }
  0x13   : > { %p808_p12 = por %p135_p9, %p134_p8  ;;  %p466_p13 = scmp.ge.s32.totalorder %s715_s21, 2 }
  0x14   : > { %p813_p0 = por %p141_p11, %p140_p10  ;;  %p505_p1 = scmp.lt.s32.totalorder %s715_s21, 2 }
  0x15   : > { %s190_s6 = sshll.u32 %s931_s2, 4  ;;  %s717_s7 = smov [#allocation3]   ;;  %s191_s6 = int_to_ptr.hbm [resolvable:$true] %s190_s6 }
  0x16   : > { %s192_s8 = sshll.u32 %s717_s7, 4  ;;  %p823_p2 = pnand %p505_p1, %p790_p4  ;;  %s193_s8 = int_to_ptr.vmem [resolvable:$true] %s192_s8 }
  0x17   : > { %p469_p3 = scmp.ge.s32.totalorder %s715_s21, 1  ;;  %p197_p5 = scmp.lt.s32.totalorder %s715_s21, 3 }
  0x18   : > { %s582_s10 = sshra.s32 %s191_s6, 4  ;;  %p586_p8 = pneg %p823_p2  ;;  %s583_s10 = int_to_ptr.hbm [resolvable:$true] %s582_s10 }
  0x19   : > { %s584_s11 = scalar_lea.hbm %s583_s10, 2  ;;  %s589_s17 = scalar_lea.hbm %s931_s2, 2 }
  0x1a   : > { %p585_p7 = scmp.ne.s32.totalorder %s583_s10, %s584_s11  ;;  %p591_p11 = scmp.lt.s32.totalorder %s589_s17, %s584_s11 }
  0x1c   : > { %p587_p9 = pnand %p586_p8, %p585_p7 }
  0x1e   : > { %p588_p10 = pneg %p587_p9 }
  0x20   : > { %p593_p4 = pnand %p591_p11, %p588_p10 }
  0x22   : > { %596 = shalt.err (!%p593_p4)
}
  0x23   : > { %500 = dma.hbm_to_vmem [thread:$0]  (!%p823_p2), %s191_s6, 32, %s193_s8, [#allocation4]  }
  0x24   : > { %p198_p1 = pnand %p469_p3, %p197_p5 }
  0x25   : > { %s203_s0 = sand.u32 (!%p198_p1), 1, %s703_s18  }
  0x26   : > { %201 = sbr.rel (%p198_p1) target bundleno = 130 (0x82), region = 32  ;;  %s470_s22 = sshll.u32 (!%p198_p1), %s203_s0, 1 }
  0x27   : > { %s204_s24 = scalar_lea.sflag (!%p198_p1), [#allocation4], %s203_s0  ;;  %s207_s26 = scalar_lea.vmem (!%p198_p1), [#allocation3], %s470_s22 }
  0x2b   : > { %677 = dma.done.wait (%p794_p6), %s204_s24, 32  }
  0x2c   : > { %679 = vsyncadd (%p794_p6), %s204_s24, 4294967264  ;;  %p239_p2 = scmp.lt.s32.totalorder %s707_s19, 0  ;;  %s235_s27 = sand.u32 1, %s691_s15   ;;  %v718_v0 = vmov 0.0   ;;  %v260_v1 = vld [vmem:[%s207_s26] sm:$0x3] }
  0x2d   : > { %s847_s4 = sld [smem:[#allocation2]]  ;;  %s491_s5 = smul.u32 3, %s235_s27 }
  0x2e   : > { %s240_s6 = scalar_select %p239_p2, %s707_s19, 0 }
  0x2f   : > { %s489_s7 = sshll.u32 %s707_s19, 1  ;;  %s853_s8 = scalar_lea.vmem [#allocation6], %s491_s5 }
  0x30   : > { %s947_s6 = smov (!%p239_p2, %s240_s6), 0  ;;  %256 = vst [vmem:[%s853_s8] sm:$0x1] %v718_v0  ;;  %s859_s25 = sadd.s32 2, %s489_s7 }
  0x31   : > { %257 = vst [vmem:[%s853_s8 + $0x1] sm:$0x1] %v718_v0  ;;  %s474_s9 = sshll.u32 %s947_s6, 1 }
  0x32   : > { %258 = vst [vmem:[%s853_s8 + $0x2] sm:$0x1] %v718_v0  ;;  %s244_s12 = scalar_lea.vmem %s930_s1, %s474_s9 }
  0x33   : > { %v259_v2 = vld [vmem:[%s244_s12] sm:$0x3]  ;;  %p476_p6 = scmp.gt.s32.totalorder %s859_s25, %s847_s4 }
  0x35   : > { %268 = sbr.rel (%p476_p6) target bundleno = 78 (0x4e), region = 44 }
  0x3a   : > { %v270_v3 = vmul.f32 %v260_v1, %v259_v2  ;;  %vm271_vm0 = vcmask 1041408   ;;  %v283_v4 = vmul.f32 %v259_v2, %v259_v2  ;;  %v295_v5 = vmul.f32 %v260_v1, %v260_v1  ;;  %v269_v24 = vld [vmem:[%s853_s8] sm:$0x1]  ;;  %v477_v25 = vld [vmem:[%s853_s8 + $0x1] sm:$0x1] }
  0x3b   : > { %v479_v26 = vld [vmem:[%s853_s8 + $0x2] sm:$0x1] }
  0x3c   : > { %v272_v6 = vsel %vm271_vm0, %v270_v3, 0.0  ;;  %v284_v7 = vsel %vm271_vm0, %v283_v4, 0.0  ;;  %v296_v8 = vsel %vm271_vm0, %v295_v5, 0.0 }
  0x3d   : > { %v273_v9 = vrot.slane %v272_v6, 4  ;;  %v285_v10 = vrot.slane %v284_v7, 4  ;;  %v297_v11 = vrot.slane %v296_v8, 4 }
  0x3f   : > { %v274_v12 = vadd.f32 %v273_v9, %v272_v6  ;;  %v286_v13 = vadd.f32 %v285_v10, %v284_v7  ;;  %v298_v14 = vadd.f32 %v297_v11, %v296_v8 }
  0x41   : > { %v275_v15 = vrot.slane %v274_v12, 2  ;;  %v287_v16 = vrot.slane %v286_v13, 2  ;;  %v299_v17 = vrot.slane %v298_v14, 2 }
  0x43   : > { %v276_v18 = vadd.f32 %v275_v15, %v274_v12  ;;  %v288_v19 = vadd.f32 %v287_v16, %v286_v13  ;;  %v300_v20 = vadd.f32 %v299_v17, %v298_v14 }
  0x45   : > { %v277_v21 = vrot.slane %v276_v18, 1  ;;  %v289_v22 = vrot.slane %v288_v19, 1  ;;  %v301_v23 = vrot.slane %v300_v20, 1 }
  0x47   : > { %v278_v27 = vadd.f32 %v277_v21, %v276_v18  ;;  %v290_v28 = vadd.f32 %v289_v22, %v288_v19  ;;  %v302_v29 = vadd.f32 %v301_v23, %v300_v20 }
  0x49   : > { %v279_v30 = vadd.f32 %v278_v27, %v269_v24  ;;  %v291_v31 = vadd.f32 %v477_v25, %v290_v28  ;;  %v303_v32 = vadd.f32 %v479_v26, %v302_v29 }
  0x4b   : > { %280 = vst [vmem:[%s853_s8] sm:$0x1] %v279_v30 }
  0x4c   : > { %478 = vst [vmem:[%s853_s8 + $0x1] sm:$0x1] %v291_v31 }
  0x4d   : > { %480 = vst [vmem:[%s853_s8 + $0x2] sm:$0x1] %v303_v32 }
  0x4e PF: > { %p481_p3 = scmp.le.s32.totalorder %s859_s25, %s847_s4 }
  0x50   : > { %307 = sbr.rel (%p481_p3) target bundleno = 113 (0x71), region = 48 }
  0x55   : > { %v309_v33 = vlaneseq  ;;  %v311_v34 = vstv %s489_s7  ;;  %v313_v36 = vstv %s847_s4  ;;  %vm321_vm2 = vcmask 1041408   ;;  %v319_v61 = vld [vmem:[%s853_s8] sm:$0x1]  ;;  %v483_v62 = vld [vmem:[%s853_s8 + $0x1] sm:$0x1] }
  0x56   : > { %v485_v63 = vld [vmem:[%s853_s8 + $0x2] sm:$0x1] }
  0x57   : > { %v310_v35 = vshrl.u32 %v309_v33, 7 }
  0x59   : > { %v312_v37 = vadd.s32 %v311_v34, %v310_v35 }
  0x5b   : > { %vm314_vm1 = vcmp.lt.s32.totalorder %v312_v37, %v313_v36 }
  0x5c   : > { %v317_v38 = vsel %vm314_vm1, %v259_v2, 0.0  ;;  %v318_v39 = vsel %vm314_vm1, %v260_v1, 0.0 }
  0x5d   : > { %v320_v40 = vmul.f32 %v318_v39, %v317_v38  ;;  %v333_v41 = vmul.f32 %v317_v38, %v317_v38  ;;  %v345_v42 = vmul.f32 %v318_v39, %v318_v39 }
  0x5f   : > { %v322_v43 = vsel %vm321_vm2, %v320_v40, 0.0  ;;  %v334_v44 = vsel %vm321_vm2, %v333_v41, 0.0  ;;  %v346_v45 = vsel %vm321_vm2, %v345_v42, 0.0 }
  0x60   : > { %v323_v46 = vrot.slane %v322_v43, 4  ;;  %v335_v47 = vrot.slane %v334_v44, 4  ;;  %v347_v48 = vrot.slane %v346_v45, 4 }
  0x62   : > { %v324_v49 = vadd.f32 %v323_v46, %v322_v43  ;;  %v336_v50 = vadd.f32 %v335_v47, %v334_v44  ;;  %v348_v51 = vadd.f32 %v347_v48, %v346_v45 }
  0x64   : > { %v325_v52 = vrot.slane %v324_v49, 2  ;;  %v337_v53 = vrot.slane %v336_v50, 2  ;;  %v349_v54 = vrot.slane %v348_v51, 2 }
  0x66   : > { %v326_v55 = vadd.f32 %v325_v52, %v324_v49  ;;  %v338_v56 = vadd.f32 %v337_v53, %v336_v50  ;;  %v350_v57 = vadd.f32 %v349_v54, %v348_v51 }
  0x68   : > { %v327_v58 = vrot.slane %v326_v55, 1  ;;  %v339_v59 = vrot.slane %v338_v56, 1  ;;  %v351_v60 = vrot.slane %v350_v57, 1 }
  0x6a   : > { %v328_v0 = vadd.f32 %v327_v58, %v326_v55  ;;  %v340_v1 = vadd.f32 %v339_v59, %v338_v56  ;;  %v352_v2 = vadd.f32 %v351_v60, %v350_v57 }
  0x6c   : > { %v329_v3 = vadd.f32 %v328_v0, %v319_v61  ;;  %v341_v4 = vadd.f32 %v483_v62, %v340_v1  ;;  %v353_v5 = vadd.f32 %v485_v63, %v352_v2 }
  0x6e   : > { %330 = vst [vmem:[%s853_s8] sm:$0x1] %v329_v3 }
  0x6f   : > { %484 = vst [vmem:[%s853_s8 + $0x1] sm:$0x1] %v341_v4 }
  0x70   : > { %486 = vst [vmem:[%s853_s8 + $0x2] sm:$0x1] %v353_v5 }
  0x71 PF: > { %s492_s13 = smul.u32 3, %s707_s19  ;;  %s367_s17 = sshll.u32 %s853_s8, 4  ;;  %s368_s17 = int_to_ptr.vmem [resolvable:$true] %s367_s17 }
  0x72   : > { %s356_s4 = scalar_lea.sflag [#allocation5], %s235_s27  ;;  %s632_s19 = scalar_lea.hbm %s932_s3, 6 }
  0x73   : > { %s366_s24 = scalar_lea.hbm %s932_s3, %s492_s13 }
  0x74   : > { %s369_s26 = sshll.u32 %s366_s24, 4  ;;  %s370_s26 = int_to_ptr.hbm [resolvable:$true] %s369_s26 }
  0x75   : > { %s626_s5 = sshra.s32 %s370_s26, 4  ;;  %s627_s5 = int_to_ptr.hbm [resolvable:$true] %s626_s5 }
  0x76   : > { %s628_s6 = scalar_lea.hbm %s627_s5, 3  ;;  %p633_p9 = scmp.lt.s32.totalorder %s627_s5, %s932_s3 }
  0x77   : > { %p629_p5 = scmp.ne.s32.totalorder %s627_s5, %s628_s6  ;;  %p634_p10 = scmp.lt.s32.totalorder %s632_s19, %s628_s6 }
  0x79   : > { %p630_p7 = pnand %p629_p5, %p808_p12  ;;  %p635_p11 = por %p634_p10, %p633_p9 }
  0x7b   : > { %p631_p8 = pneg %p630_p7 }
  0x7d   : > { %p636_p4 = pnand %p635_p11, %p631_p8 }
  0x7f   : > { %639 = shalt.err (!%p636_p4)
}
  0x80   : > { %s719_s27 = smov 16   ;;  %s720_s10 = smov 1  }
  0x81   : > { %495 = dma.vmem_to_hbm [thread:$0]  (%p808_p12), %s368_s17, 48, %s370_s26, %s356_s4, %s719_s27, %s719_s27, %s720_s10  }
  0x82 PF: > { %s384_s11 = sand.u32 1, %s687_s14   ;;  %p502_p1 = pnand %p466_p13, %p813_p0 }
  0x83   : > { %s385_s12 = scalar_lea.sflag [#allocation5], %s384_s11 }
  0x84   : > { %p503_p2 = pneg %p502_p1 }
  0x86   : > { %681 = dma.done.wait (%p503_p2), %s385_s12, 48  }
  0x87   : > { %683 = vsyncadd (%p503_p2), %s385_s12, 4294967248  ;;  %s20_s21 = sadd.s32 1, %s715_s21   ;;  %s938_s14 = smov %s691_s15 }
  0x88   : > { %p17_p6 = scmp.ge.s32.totalorder %s20_s21, 4   ;;  %s939_s15 = smov %s695_s16 }
  0x89   : > { %s940_s16 = smov %s802_s28  ;;  %s941_s17 = smov %s703_s18 }
  0x8a   : > { %s919_s18 = smov 0   ;;  %s942_s19 = smov %s711_s20 }
  0x8b   : > { %s943_s20 = smov %s945_s23  ;;  %19 = sbr.rel (!%p17_p6) target bundleno = 9 (0x9), region = 96 }
  0x90   :  { %391 = vsyncpa [#allocation4], 1 }
  0x91   :  { %393 = vsyncpa [#allocation4 + $0x1], 1 }
  0x92   :  { %394 = vsyncpa [#allocation5], 1 }
  0x93   :  { %396 = vsyncpa [#allocation5 + $0x1], 1 }

</bundles_post_ra>
